<compile_context>
chip_gen: v6e
topology: v6e:2x2x1
jax: 0.10.0
libtpu: 0.0.40
codegen_flags: <defaults>
</compile_context>

<pallas_src>
import math

import jax
import jax.numpy as jnp
from jax.experimental import pallas as pl
from jax.experimental.pallas import tpu as pltpu

_MAX_OUTSTANDING_DMAS = 4          # a few large DMAs in flight saturate HBM
_MIN_CHUNK_BYTES = 1 << 20         # don't split copies smaller than ~1 MiB


def _make_hbm_copy_kernel(row_chunks):
    """Kernel factory: copy `x` to `o` with one HBM->HBM DMA per static chunk."""

    def kernel(x_ref, o_ref, sem):
        copies = []
        # Start all DMAs first (multiple outstanding), then wait on all.
        for i, (start, size) in enumerate(row_chunks):
            cp = pltpu.make_async_copy(
                x_ref.at[pl.ds(start, size)],
                o_ref.at[pl.ds(start, size)],
                sem.at[i],
            )
            cp.start()
            copies.append(cp)
        for cp in copies:
            cp.wait()

    return kernel


def _row_chunks(n_rows, row_bytes):
    """Split [0, n_rows) into <= _MAX_OUTSTANDING_DMAS balanced static chunks."""
    total_bytes = n_rows * row_bytes
    if n_rows <= 1 or total_bytes <= _MIN_CHUNK_BYTES:
        return [(0, n_rows)]
    k = min(_MAX_OUTSTANDING_DMAS, n_rows,
            max(1, total_bytes // _MIN_CHUNK_BYTES))
    base, rem = divmod(n_rows, k)
    chunks, start = [], 0
    for i in range(k):
        size = base + (1 if i < rem else 0)
        chunks.append((start, size))
        start += size
    return chunks


def flatten_custom(x: jax.Array) -> jax.Array:
    """Equivalent of torch.flatten(x, 1): (N, ...) -> (N, prod(rest))."""
    n = x.shape[0]
    d = math.prod(x.shape[1:]) if x.ndim > 1 else 1

    # The flatten itself is metadata-only glue for a contiguous row-major array.
    x2 = jnp.reshape(x, (n, d))
    if x2.size == 0:
        return x2

    itemsize = jnp.dtype(x.dtype).itemsize
    chunks = _row_chunks(n, d * itemsize)
    cost = pl.CostEstimate(
        flops=0, transcendentals=0, bytes_accessed=2 * n * d * itemsize)

    return pl.pallas_call(
        _make_hbm_copy_kernel(chunks),
        out_shape=jax.ShapeDtypeStruct((n, d), x.dtype),
        in_specs=[pl.BlockSpec(memory_space=pl.ANY)],    # input stays in HBM
        out_specs=pl.BlockSpec(memory_space=pl.ANY),     # output stays in HBM
        scratch_shapes=[pltpu.SemaphoreType.DMA((len(chunks),))],
        cost_estimate=cost,
    )(x2)


if __name__ == "__main__":
    key = jax.random.PRNGKey(0)
    # Small NCHW input consistent with the module's forward.
    x = jax.random.normal(key, (2, 4, 16, 16), dtype=jnp.float32)

    # Pure-JAX reference (torch.flatten(x, 1) semantics).
    y_ref = jax.block_until_ready(jnp.reshape(x, (x.shape[0], -1)))

    y = jax.block_until_ready(flatten_custom(x))

    assert y.shape == (2, 4 * 16 * 16)
    assert y.dtype == x.dtype
    assert bool(jnp.array_equal(y, y_ref))

    print("KERNEL_OK")
</pallas_src>

<mosaic_0001>
module attributes {stable_mosaic.version = 11 : i64} {
  func.func @kernel(%arg0: memref<2x1024xf32, #tpu.memory_space<any>>, %arg1: memref<2x1024xf32, #tpu.memory_space<any>>, %arg2: memref<1x!tpu.dma_semaphore, #tpu.memory_space<semaphore_mem>>) attributes {dimension_semantics = [], scalar_prefetch = 0 : i64, scratch_operands = 1 : i64, tpu.core_type = #tpu.core_type<tc>} {
    %c0_i32 = arith.constant 0 : i32
    %c0_i32_0 = arith.constant 0 : i32
    %c0_i32_1 = arith.constant 0 : i32
    %0 = tpu.memref_slice %arg0[%c0_i32_0, %c0_i32_1] : memref<2x1024xf32, #tpu.memory_space<any>> -> memref<2x1024xf32, #tpu.memory_space<any>>
    %c0_i32_2 = arith.constant 0 : i32
    %c0_i32_3 = arith.constant 0 : i32
    %1 = tpu.memref_slice %arg1[%c0_i32_2, %c0_i32_3] : memref<2x1024xf32, #tpu.memory_space<any>> -> memref<2x1024xf32, #tpu.memory_space<any>>
    %2 = tpu.memref_slice %arg2[%c0_i32] : memref<1x!tpu.dma_semaphore, #tpu.memory_space<semaphore_mem>> -> memref<1x!tpu.dma_semaphore, #tpu.memory_space<semaphore_mem>>
    %3 = tpu.memref_squeeze %2 : memref<1x!tpu.dma_semaphore, #tpu.memory_space<semaphore_mem>> -> memref<!tpu.dma_semaphore, #tpu.memory_space<semaphore_mem>>
    tpu.enqueue_dma source(%0 : memref<2x1024xf32, #tpu.memory_space<any>>) target(%1 : memref<2x1024xf32, #tpu.memory_space<any>>) target_semaphore(%3 : memref<!tpu.dma_semaphore, #tpu.memory_space<semaphore_mem>>)
    %c0_i32_4 = arith.constant 0 : i32
    %c0_i32_5 = arith.constant 0 : i32
    %c0_i32_6 = arith.constant 0 : i32
    %4 = tpu.memref_slice %arg0[%c0_i32_5, %c0_i32_6] : memref<2x1024xf32, #tpu.memory_space<any>> -> memref<2x1024xf32, #tpu.memory_space<any>>
    %c0_i32_7 = arith.constant 0 : i32
    %c0_i32_8 = arith.constant 0 : i32
    %5 = tpu.memref_slice %arg1[%c0_i32_7, %c0_i32_8] : memref<2x1024xf32, #tpu.memory_space<any>> -> memref<2x1024xf32, #tpu.memory_space<any>>
    %6 = tpu.memref_slice %arg2[%c0_i32_4] : memref<1x!tpu.dma_semaphore, #tpu.memory_space<semaphore_mem>> -> memref<1x!tpu.dma_semaphore, #tpu.memory_space<semaphore_mem>>
    %7 = tpu.memref_squeeze %6 : memref<1x!tpu.dma_semaphore, #tpu.memory_space<semaphore_mem>> -> memref<!tpu.dma_semaphore, #tpu.memory_space<semaphore_mem>>
    tpu.wait_dma2 semaphore(%7 : memref<!tpu.dma_semaphore, #tpu.memory_space<semaphore_mem>>) src(%4 : memref<2x1024xf32, #tpu.memory_space<any>>) dst(%5 : memref<2x1024xf32, #tpu.memory_space<any>>)
    return
  }
}

</mosaic_0001>

<bundles_post_ra>
// kernel: tpu_custom_call.1
= control target key start
LH: loop header
LB: loop body
LE: loop exit
PB: predicated region body
PF: predicated region fallthrough
CT: control target
= control target key end

     0   :  { %s29_s6 = smov [#allocation2]   ;;  %s30_s7 = smov 131072   ;;  %s48_s0 = inlined_call_operand.hbm [shape: f32[2,1024], index: 0, kind: input, shape index: {}]   ;;  %s49_s1 = inlined_call_operand.hbm [shape: f32[2,1024], index: 1, kind: output, shape index: {}]  }
   0x1   :  { %s31_s8 = smov 0  }
   0x2   :  { %12 = dma.general %s48_s0, 256, %s49_s1, %s29_s6, %s30_s7, [#allocation4], %s31_s8, 0  }
   0x3   :  { %27 = dma.done.wait [#allocation2], 256 }
   0x4   :  { %28 = vsyncadd [#allocation2], 4294967040 }
   0x5   :  { %17 = vsyncmov [#allocation2] }
   0x8   :  { %s18_s13 = vpop.sfrf %17 }
   0x9   :  { %p23_p0 = scmp.ne.s32.totalorder %s18_s13, 0 }
   0xb   :  { %22 = shalt.err (%p23_p0)  }

</bundles_post_ra>
